<compile_context>
chip_gen: v7x
topology: tpu7x:2x2x1
jax: 0.10.0
libtpu: 0.0.40
codegen_flags: <defaults>
</compile_context>

<pallas_src>
import functools

import jax
import jax.numpy as jnp
from jax.experimental import pallas as pl
from jax.experimental.pallas import tpu as pltpu


TMAX = 100.0
_CIN_PAD = 8            # pad the 4 input channels (t + 3) to the f32 sublane granule
_KMAX = 5 * 5 * 16      # deepest im2col contraction (5x5 conv over 16 channels)
_PAD_MAX = 2            # largest periodic padding used (the 5x5 convs)


# ----------------------------- activations ---------------------------------
def _gelu(x):
    # torch.nn.GELU() default is the exact (erf) formulation.
    return jax.nn.gelu(x, approximate=False)


def _softplus(x):
    return jax.nn.softplus(x)


# ------------------------- fused Pallas kernel ------------------------------
def _fused_cnn_kernel(x_ref, w_ref, o_ref, patches_ref, *,
                      H, W, B, layout, roll_like_jnp):
    """x_ref       : [CIN_PAD, H*W*B]  channels on sublanes, batch interleaved on lanes
       w_ref       : [16, SLAB_COLS]   all weights, 128-aligned column slots
       o_ref       : [1, H*W*B]        lane-dense output
       patches_ref : [KMAX, H*W*B]     im2col scratch (shared by every layer)
    """
    P = H * W
    L = P * B

    def _roll(v, pix):
        # Per-image circular pixel roll (jnp.roll semantics).  lane = pixel*B + b,
        # so rolling the combined lane axis by (pix % P) * B shifts each image
        # within itself and never crosses the image boundary.
        s = (pix % P) * B
        if not roll_like_jnp:
            s = (L - s) % L
        if s == 0:
            return v
        return pltpu.roll(v, s, axis=1)

    def _masks(rows):
        # Hoisted width-wrap select masks: for dw>0 pick the +W-rolled copy where
        # col < dw; for dw<0 pick the -W-rolled copy where col >= W+dw.
        col = jax.lax.broadcasted_iota(jnp.int32, (rows, L), 1)
        col = (col // B) % W
        m = {}
        for d in range(1, _PAD_MAX + 1):
            m[d] = col < d
            m[-d] = col >= W - d
        return m

    masks8 = _masks(_CIN_PAD)
    masks16 = _masks(16)

    def _wmat(name, kk):
        start, cout = layout[name]
        return w_ref[0:cout, start:start + kk]

    def _conv(v, name, k, pad, masks):
        # v: [Cin, L] -> [Cout, L]; a KxK periodic conv as ONE im2col MXU matmul.
        cin = v.shape[0]
        if k == 1:
            return jnp.dot(_wmat(name, cin), v, preferred_element_type=jnp.float32)
        # (2*pad+1) width-shift-and-wrap-fixed bases: 2 shared rolls + 1 where per dw!=0.
        v_pw = _roll(v, W)        # v[p - W]   (fix for dw > 0)
        v_mw = _roll(v, -W)       # v[p + W]   (fix for dw < 0)
        bases = {}
        for dw in range(-pad, pad + 1):
            if dw == 0:
                bases[dw] = v
            elif dw > 0:
                bases[dw] = jnp.where(masks[dw], v_pw, v)
            else:
                bases[dw] = jnp.where(masks[dw], v_mw, v)
        # One roll per tap; the H component is a multiple of W so it preserves
        # lane%W and the width-wrap fix baked into the base stays valid.
        for i in range(k):
            dh = i - pad
            for j in range(k):
                dw = j - pad
                t = i * k + j
                patches_ref[t * cin:(t + 1) * cin, :] = _roll(bases[dw],
                                                              -(dh * W + dw))
        kk = k * k * cin
        return jnp.dot(_wmat(name, kk), patches_ref[0:kk, :],
                       preferred_element_type=jnp.float32)

    x = x_ref[...]                                            # [8, L]

    # branch 1: 3x3+GELU, 3x3+GELU, 3x3+Softplus, 3x3+Softplus, 1x1
    a = _gelu(_conv(x, "w1a", 3, 1, masks8))
    a = _gelu(_conv(a, "w1b", 3, 1, masks16))
    a = _softplus(_conv(a, "w1c", 3, 1, masks16))
    a = _softplus(_conv(a, "w1d", 3, 1, masks16))
    y1 = _conv(a, "w1e", 1, 0, None)                          # [8, L]

    # branch 2: 5x5+Softplus, 5x5+Softplus, 1x1
    u = _softplus(_conv(x, "w2a", 5, 2, masks8))
    u = _softplus(_conv(u, "w2b", 5, 2, masks16))
    y2 = _conv(u, "w2c", 1, 0, None)                          # [8, L]

    # head: 1x1(16->8)+Softplus, 1x1(8->1).  The channel concat [y1, y2] is
    # folded into split weights (w3a1 | w3a2) -> no sublane concatenate.
    h = _softplus(
        jnp.dot(_wmat("w3a1", 8), y1, preferred_element_type=jnp.float32)
        + jnp.dot(_wmat("w3a2", 8), y2, preferred_element_type=jnp.float32))
    o_ref[...] = jnp.dot(_wmat("w3b", 8), h,
                         preferred_element_type=jnp.float32)  # [1, L]


# ------------------------------ wrapper --------------------------------------
def _conv_mat(w, cin_pad=None):
    """[k, k, Cin, Cout] conv weight -> [Cout, k*k*Cin] im2col matrix."""
    k, _, cin, cout = w.shape
    if cin_pad is not None and cin_pad > cin:
        w = jnp.pad(w, ((0, 0), (0, 0), (0, cin_pad - cin), (0, 0)))
        cin = cin_pad
    return jnp.transpose(w, (3, 0, 1, 2)).reshape(cout, k * k * cin)


def pack_weights(params):
    """Pack all layer weights into one [16, N*128] slab (call once, outside jit)."""
    p1, p2, p3 = params["cnn"], params["cnn2"], params["cnn3"]
    m3 = p3[0][0, 0]                                          # [16, 8]
    mats = [
        ("w1a", _conv_mat(p1[0], _CIN_PAD)),
        ("w1b", _conv_mat(p1[1])),
        ("w1c", _conv_mat(p1[2])),
        ("w1d", _conv_mat(p1[3])),
        ("w1e", p1[4][0, 0].T),                               # [8, 16]
        ("w2a", _conv_mat(p2[0], _CIN_PAD)),
        ("w2b", _conv_mat(p2[1])),
        ("w2c", p2[2][0, 0].T),                               # [8, 16]
        ("w3a1", m3[:8, :].T),                                # [8, 8]  acts on y1
        ("w3a2", m3[8:, :].T),                                # [8, 8]  acts on y2
        ("w3b", p3[1][0, 0].T),                               # [1, 8]
    ]
    blocks, layout, start = [], {}, 0
    for name, m in mats:
        cout, kk = m.shape
        slot = ((kk + 127) // 128) * 128                      # 128-aligned slot
        layout[name] = (start, int(cout))
        blocks.append(jnp.zeros((16, slot), jnp.float32).at[:cout, :kk].set(m))
        start += slot
    return jnp.concatenate(blocks, axis=1), layout


def cnn_forward(wslab, x_nchw, t, *, layout, roll_like_jnp=True):
    """x_nchw: [B, in_channels-1, H, W], t: [B, 1, 1, 1] -> [B, 1, H, W]."""
    B, _, H, W = x_nchw.shape
    L = H * W * B

    # input = cat([t / Tmax + 0 * x[:, :1], x], dim=1); pad channels 4 -> 8 and
    # interleave the batch on the lane axis: [C, H, W, B] -> [C, H*W*B].
    t_ch = t / TMAX + 0.0 * x_nchw[:, :1]
    inp = jnp.concatenate([t_ch, x_nchw], axis=1)             # [B, 4, H, W]
    cin = inp.shape[1]
    inp = jnp.pad(inp, ((0, 0), (0, _CIN_PAD - cin), (0, 0), (0, 0)))
    x_lanes = jnp.transpose(inp, (1, 2, 3, 0)).reshape(_CIN_PAD, L)

    kernel = functools.partial(_fused_cnn_kernel, H=H, W=W, B=B,
                               layout=layout, roll_like_jnp=roll_like_jnp)
    out = pl.pallas_call(
        kernel,
        out_shape=jax.ShapeDtypeStruct((1, L), jnp.float32),
        in_specs=[pl.BlockSpec(memory_space=pltpu.MemorySpace.VMEM),
                  pl.BlockSpec(memory_space=pltpu.MemorySpace.VMEM)],
        out_specs=pl.BlockSpec(memory_space=pltpu.MemorySpace.VMEM),
        scratch_shapes=[pltpu.VMEM((_KMAX, L), jnp.float32)],
    )(x_lanes, wslab)
    return jnp.transpose(out.reshape(1, H, W, B), (3, 0, 1, 2))   # [B,1,H,W]


# ------------------- pltpu.roll direction self-calibration -------------------
def _roll_matches_jnp():
    """True iff pltpu.roll follows jnp.roll semantics (out[i] = x[i - shift])."""
    def kern(x_ref, o_ref):
        o_ref[...] = pltpu.roll(x_ref[...], 1, axis=1)

    x = jnp.tile(jnp.arange(128, dtype=jnp.float32)[None, :], (8, 1))
    y = pl.pallas_call(
        kern,
        out_shape=jax.ShapeDtypeStruct((8, 128), jnp.float32),
        in_specs=[pl.BlockSpec(memory_space=pltpu.MemorySpace.VMEM)],
        out_specs=pl.BlockSpec(memory_space=pltpu.MemorySpace.VMEM),
    )(x)
    return bool(y[0, 0] == 127.0)


# ----------------------------- parameters -----------------------------------
def make_params(key, in_channels):
    keys = iter(jax.random.split(key, 16))

    def w(cin, cout, k):
        # PeriodicConv2d uses nn.Conv2d(..., bias=False): weight-only params.
        bound = 1.0 / (cin * k * k) ** 0.5
        return jax.random.uniform(next(keys), (k, k, cin, cout), jnp.float32,
                                  -bound, bound)

    return {
        # self.cnn : 3x3(pad1) x4 then 1x1
        "cnn": [w(in_channels, 16, 3), w(16, 16, 3), w(16, 16, 3),
                w(16, 16, 3), w(16, 8, 1)],
        # self.cnn2 : 5x5(pad2) x2 then 1x1
        "cnn2": [w(in_channels, 16, 5), w(16, 16, 5), w(16, 8, 1)],
        # self.cnn3 : 1x1, 1x1
        "cnn3": [w(16, 8, 1), w(8, 1, 1)],
    }


# --------------------- pure-JAX reference (validation) -----------------------
def _reference_forward(params, x, t):
    def pconv(z, w, pad):
        k = w.shape[0]
        zp = (jnp.pad(z, ((0, 0), (0, 0), (pad, pad), (pad, pad)), mode="wrap")
              if pad else z)
        Ho = zp.shape[2] - (k - 1)
        Wo = zp.shape[3] - (k - 1)
        out = jnp.zeros((z.shape[0], w.shape[3], Ho, Wo), jnp.float32)
        for i in range(k):
            for j in range(k):
                out = out + jnp.einsum(
                    "bchw,co->bohw", zp[:, :, i:i + Ho, j:j + Wo], w[i, j],
                    precision=jax.lax.Precision.HIGHEST)
        return out

    inp = jnp.concatenate([t / TMAX + 0.0 * x[:, :1], x], axis=1)
    p1, p2, p3 = params["cnn"], params["cnn2"], params["cnn3"]
    y = _gelu(pconv(inp, p1[0], 1))
    y = _gelu(pconv(y, p1[1], 1))
    y = _softplus(pconv(y, p1[2], 1))
    y = _softplus(pconv(y, p1[3], 1))
    y = pconv(y, p1[4], 0)
    y2 = _softplus(pconv(inp, p2[0], 2))
    y2 = _softplus(pconv(y2, p2[1], 2))
    y2 = pconv(y2, p2[2], 0)
    z = jnp.concatenate([y, y2], axis=1)
    y3 = _softplus(pconv(z, p3[0], 0))
    return pconv(y3, p3[1], 0)


# -------------------------------- main ---------------------------------------
if __name__ == "__main__":
    key = jax.random.PRNGKey(0)
    k_param, k_x, k_t = jax.random.split(key, 3)

    in_channels = 4          # module init value; x itself carries in_channels-1
    B, H, W = 2, 16, 16

    params = make_params(k_param, in_channels)
    x = jax.random.normal(k_x, (B, in_channels - 1, H, W), jnp.float32)
    t = jax.random.uniform(k_t, (B, 1, 1, 1), jnp.float32, 0.0, 100.0)

    wslab, layout = pack_weights(params)          # packed once, outside jit
    roll_like_jnp = _roll_matches_jnp()
    fwd = jax.jit(functools.partial(cnn_forward, layout=layout,
                                    roll_like_jnp=roll_like_jnp))
    out = fwd(wslab, x, t)
    jax.block_until_ready(out)

    assert out.shape == (B, 1, H, W), out.shape
    assert out.dtype == jnp.float32

    ref = _reference_forward(params, x, t)
    max_err = float(jnp.max(jnp.abs(out - ref)))
    assert max_err < 5e-2, f"mismatch vs pure-JAX reference: {max_err}"
    print("KERNEL_OK")
</pallas_src>

<mosaic_0001>
module attributes {stable_mosaic.version = 11 : i64} {
  func.func @kern(%arg0: memref<8x128xf32, #tpu.memory_space<vmem>>, %arg1: memref<8x128xf32, #tpu.memory_space<vmem>>) attributes {dimension_semantics = [], scalar_prefetch = 0 : i64, scratch_operands = 0 : i64, tpu.core_type = #tpu.core_type<tc>} {
    %c0 = arith.constant 0 : index
    %c0_0 = arith.constant 0 : index
    %0 = vector.load %arg0[%c0, %c0_0] : memref<8x128xf32, #tpu.memory_space<vmem>>, vector<8x128xf32>
    %c1_i32 = arith.constant 1 : i32
    %1 = tpu.dynamic_rotate %0 by %c1_i32 dim 1 : vector<8x128xf32>, i32 -> vector<8x128xf32>
    %c0_1 = arith.constant 0 : index
    %c0_2 = arith.constant 0 : index
    %2 = vector.load %arg1[%c0_1, %c0_2] : memref<8x128xf32, #tpu.memory_space<vmem>>, vector<8x128xf32>
    tpu.vector_store %arg1[%c0_1, %c0_2], %1 {strides = array<i32>} : memref<8x128xf32, #tpu.memory_space<vmem>>, vector<8x128xf32>,
    return
  }
}

</mosaic_0001>

<bundles_post_ra>
// kernel: tpu_custom_call.1
= control target key start
LH: loop header
LB: loop body
LE: loop exit
PB: predicated region body
PF: predicated region fallthrough
CT: control target
= control target key end

     0   :  { %6 = vsyncpa [#allocation3], 0  ;;  %s128_s0 = inlined_call_operand.hbm [shape: f32[8,128], index: 0, kind: input, shape index: {}]   ;;  %s129_s1 = inlined_call_operand.hbm [shape: f32[8,128], index: 1, kind: output, shape index: {}]  }
   0x1   :  { %7 = vsyncpa [#allocation4], 0  ;;  %s91_s6 = smov [#allocation2]   ;;  %s43_s10 = scalar_lea.hbm %s128_s0, 128 }
   0x2   :  { %s14_s7 = sshll.u32 %s91_s6, 4  ;;  %p44_p0 = scmp.ne.s32.totalorder %s128_s0, %s43_s10  ;;  %s15_s7 = int_to_ptr.vmem [resolvable:$true] %s14_s7 }
   0x3   :  { %p47_p1 = scmp.lt.u32.totalorder %s43_s10, %s128_s0 }
   0x5   :  { %p49_p2 = pnand %p47_p1, %p44_p0 }
   0x7   :  { %52 = shalt.err (!%p49_p2)
}
   0x8   :  { %s53_s15 = scalar_lea.vmem %s15_s7, 128  ;;  %p58_p4 = scmp.lt.s32.totalorder %s15_s7, %s15_s7 }
   0x9   :  { %p54_p3 = scmp.ne.s32.totalorder %s15_s7, %s53_s15  ;;  %p59_p5 = scmp.lt.s32.totalorder %s53_s15, %s53_s15 }
   0xb   :  { %p60_p6 = por %p59_p5, %p58_p4 }
   0xd   :  { %p61_p7 = pnand %p60_p6, %p54_p3 }
   0xf   :  { %64 = shalt.err (!%p61_p7)
}
  0x10   :  { %17 = dma.hbm_to_vmem [thread:$0]  %s128_s0, 128, %s15_s7, [#allocation3]  }
  0x11   :  { %87 = dma.done.wait [#allocation3], 128  }
  0x12   :  { %88 = vsyncadd [#allocation3], 4294967168  ;;  %v21_v0 = vld [vmem:[#allocation2] sm:$0xff]  ;;  %s92_s18 = smov 1   ;;  %s93_s19 = smov [#allocation5]  }
  0x13   :  { %22 = vrot.lane.b32.xlu0 %v21_v0, %s92_s18  ;;  %s31_s20 = sshll.u32 %s93_s19, 4  ;;  %s32_s20 = int_to_ptr.vmem [resolvable:$true] %s31_s20 }
  0x14   :  { %s65_s21 = scalar_lea.vmem %s32_s20, 128  ;;  %p70_p9 = scmp.lt.s32.totalorder %s32_s20, %s32_s20 }
  0x15   :  { %p66_p8 = scmp.ne.s32.totalorder %s32_s20, %s65_s21  ;;  %p71_p10 = scmp.lt.s32.totalorder %s65_s21, %s65_s21 }
  0x17   :  { %p72_p11 = por %p71_p10, %p70_p9 }
  0x19   :  { %p73_p12 = pnand %p72_p11, %p66_p8 }
  0x85   :  { %v23_v1 = vpop.permute.xlu0 %22 }
  0x86   :  { %24 = vst [vmem:[#allocation5] sm:$0xff] %v23_v1 }
  0x87   :  { %76 = shalt.err (!%p73_p12)
}
  0x88   :  { %s77_s0 = scalar_lea.hbm %s129_s1, 128 }
  0x89   :  { %p78_p13 = scmp.ne.s32.totalorder %s129_s1, %s77_s0  ;;  %p81_p0 = scmp.lt.u32.totalorder %s77_s0, %s129_s1 }
  0x8b   :  { %p83_p1 = pnand %p81_p0, %p78_p13 }
  0x8d   :  { %86 = shalt.err (!%p83_p1)
}
  0x8e   :  { %34 = dma.vmem_to_hbm [thread:$0]  %s32_s20, 128, %s129_s1, [#allocation4]  }
  0x8f   :  { %89 = dma.done.wait [#allocation4], 128  }
  0x90   :  { %90 = vsyncadd [#allocation4], 4294967168 }
  0x91   :  { %38 = vsyncpa [#allocation3], 1 }
  0x92   :  { %39 = vsyncpa [#allocation4], 1 }

</bundles_post_ra>
